<compile_context>
chip_gen: v5e
topology: v5e:2x2
jax: 0.10.0
libtpu: 0.0.40
codegen_flags: <defaults>
</compile_context>

<pallas_src>
import functools

import jax
import jax.numpy as jnp
from jax.experimental import pallas as pl
from jax.experimental.pallas import tpu as pltpu


def mha_kernel(q_ref, k_ref, v_ref, *rest,
               d_k, d_v, block_h, head_blocks, has_mask, compute_dtype):
    """One grid step = one batch block x one block of `block_h` heads."""
    if has_mask:
        mask_ref, rest = rest[0], rest[1:]
    (wq_ref, wk_ref, wv_ref, wfc_ref, gamma_ref, beta_ref,
     out_ref, attn_ref, xq_s, xk_s, xv_s, ctx_s) = rest[:12]
    bias_s = rest[12] if has_mask else None

    hb = pl.program_id(1)
    cd = compute_dtype
    Bt, Lq, D = q_ref.shape
    Lk = k_ref.shape[1]

    # ---- hoisted once-per-batch-block work: bf16 casts + mask bias ----------
    @pl.when(hb == 0)
    def _():
        xq_s[...] = q_ref[...].astype(cd)
        xk_s[...] = k_ref[...].astype(cd)
        xv_s[...] = v_ref[...].astype(cd)
        if has_mask:
            # exact 0/1 mask semantics, matching PyTorch `mask == 0`
            bias_s[...] = jnp.where(mask_ref[...] == 0.0,
                                    jnp.float32(-1e9), jnp.float32(0.0))

    xq2 = xq_s[...].reshape(Bt * Lq, D)
    xk2 = xk_s[...].reshape(Bt * Lk, D)
    xv2 = xv_s[...].reshape(Bt * Lk, D)

    # ---- per-head attention; contexts gathered into ctx_s for the fused fc --
    for h_local in range(block_h):
        # head index is a static python int when all heads fit in one step
        h = h_local if head_blocks == 1 else hb * block_h + h_local

        # per-head projections (1/sqrt(d_k) pre-folded into w_q), f32 accumulation
        qh = jnp.dot(xq2, wq_ref[h], preferred_element_type=jnp.float32)
        kh = jnp.dot(xk2, wk_ref[h], preferred_element_type=jnp.float32)
        vh = jnp.dot(xv2, wv_ref[h], preferred_element_type=jnp.float32)

        scores = jnp.einsum('bqd,bkd->bqk',
                            qh.reshape(Bt, Lq, d_k).astype(cd),
                            kh.reshape(Bt, Lk, d_k).astype(cd),
                            preferred_element_type=jnp.float32)
        if has_mask:
            scores = scores + bias_s[...]   # broadcasts over keys if mask is (Lq, 1)

        # softmax over keys in f32; approx reciprocal lands on the EUP slot
        m = jnp.max(scores, axis=-1, keepdims=True)
        e = jnp.exp(scores - m)
        s = jnp.sum(e, axis=-1, keepdims=True)
        attn = e * pl.reciprocal(s, approx=True)

        attn_ref[:, h_local, :, :] = attn.astype(attn_ref.dtype)

        ctx = jnp.einsum('bqk,bkd->bqd', attn.astype(cd),
                         vh.reshape(Bt, Lk, d_v).astype(cd),
                         preferred_element_type=jnp.float32)
        # static lane offset: the per-head contexts form one wide fc operand
        ctx_s[:, h_local * d_v:(h_local + 1) * d_v] = (
            ctx.reshape(Bt * Lq, d_v).astype(cd))

    # ---- fused output projection: one matmul of depth block_h * d_v ---------
    if head_blocks == 1:
        wfc_blk = wfc_ref[...]                                   # (n_head*d_v, D)
    else:
        wfc_blk = wfc_ref[pl.ds(hb * (block_h * d_v), block_h * d_v), :]
    proj = jnp.dot(ctx_s[...], wfc_blk,
                   preferred_element_type=jnp.float32).reshape(Bt, Lq, D)

    def layer_norm(x):
        mean = jnp.mean(x, axis=-1, keepdims=True)
        var = jnp.mean((x - mean) ** 2, axis=-1, keepdims=True)
        y = (x - mean) * jax.lax.rsqrt(var + jnp.float32(1e-6))
        return y * gamma_ref[...] + beta_ref[...]

    residual = q_ref[...]
    if head_blocks == 1:
        # single pass: residual + projection + LayerNorm, no out_ref RMW
        out_ref[...] = layer_norm(residual + proj)
    else:
        @pl.when(hb == 0)
        def _():
            out_ref[...] = residual + proj

        @pl.when(hb > 0)
        def _():
            out_ref[...] = out_ref[...] + proj

        @pl.when(hb == head_blocks - 1)
        def _():
            out_ref[...] = layer_norm(out_ref[...])


def prepare_params(params, *, n_head, d_k, d_v, compute_dtype=jnp.bfloat16):
    """One-time parameter prep: head-major bf16 weights, 1/sqrt(d_k) folded in."""
    wq, wk, wv, wfc, gamma, beta = params
    d_model = wq.shape[0]
    scale = jnp.float32(d_k) ** -0.5
    wq_h = (wq * scale).reshape(d_model, n_head, d_k).transpose(1, 0, 2).astype(compute_dtype)
    wk_h = wk.reshape(d_model, n_head, d_k).transpose(1, 0, 2).astype(compute_dtype)
    wv_h = wv.reshape(d_model, n_head, d_v).transpose(1, 0, 2).astype(compute_dtype)
    wfc_c = wfc.astype(compute_dtype)                   # natural (n_head*d_v, d_model)
    gamma2 = gamma.reshape(1, d_model).astype(jnp.float32)
    beta2 = beta.reshape(1, d_model).astype(jnp.float32)
    return wq_h, wk_h, wv_h, wfc_c, gamma2, beta2


def _vmem_capacity_bytes():
    try:
        return int(pltpu.get_tpu_info().vmem_capacity_bytes)
    except Exception:
        return 64 * 1024 * 1024          # conservative default (v7x per-core VMEM)


def _select_blocks(sz_b, n_head, len_q, len_k, d_model, d_k, d_v,
                   mask_cols, has_mask, attn_itemsize, budget):
    """Pick (block_b, block_h) so the double-buffered working set fits `budget`."""
    f32, cdb, dbuf = 4, 2, 2

    def footprint(bb, bh):
        qkv = dbuf * f32 * bb * (len_q + 2 * len_k) * d_model
        out = dbuf * f32 * bb * len_q * d_model
        attn = dbuf * attn_itemsize * bb * bh * len_q * len_k
        maskb = dbuf * f32 * bb * len_q * mask_cols if has_mask else 0
        weights = dbuf * (cdb * n_head * d_model * (2 * d_k + 2 * d_v)
                          + f32 * 2 * d_model)
        scratch = (cdb * bb * (len_q + 2 * len_k) * d_model
                   + cdb * bb * len_q * bh * d_v
                   + (f32 * bb * len_q * mask_cols if has_mask else 0))
        live = f32 * bb * (4 * len_q * len_k + 2 * len_q * d_model)
        return qkv + out + attn + maskb + weights + scratch + live

    block_h = 1
    for cand in range(n_head, 0, -1):
        if n_head % cand == 0 and footprint(1, cand) <= budget:
            block_h = cand
            break
    # keep >= 2 batch-grid blocks when possible so both v7x TensorCores get work
    bb_cap = max(1, sz_b // 2)
    block_b = 1
    for cand in range(bb_cap, 0, -1):
        if sz_b % cand == 0 and footprint(cand, block_h) <= budget:
            block_b = cand
            break
    return block_b, block_h


def multi_head_attention(q, k, v, mask, prepared_params, *, n_head, d_k, d_v,
                         compute_dtype=jnp.bfloat16, attn_dtype=jnp.bfloat16,
                         block_b=None, block_h=None):
    """q, k, v: (sz_b, len, d_model) f32.
    mask: None, (sz_b, len_q, 1) encoder form, or (sz_b, len_q, len_k) decoder form.
    prepared_params: output of prepare_params().
    Returns (output f32, attn[attn_dtype]) like the PyTorch module (eval mode)."""
    wq_h, wk_h, wv_h, wfc_c, gamma2, beta2 = prepared_params
    sz_b, len_q, d_model = q.shape
    len_k = k.shape[1]

    has_mask = mask is not None
    if has_mask:
        mask_arr = mask.astype(jnp.float32)       # narrow mask passed straight through
        mask_cols = mask_arr.shape[-1]
    else:
        mask_arr = None
        mask_cols = 1

    vmem_cap = _vmem_capacity_bytes()
    vmem_limit = (vmem_cap * 3) // 4              # ~96 MiB on v5e/v6e, ~48 MiB on v7x

    if block_b is None or block_h is None:
        sel_b, sel_h = _select_blocks(
            sz_b, n_head, len_q, len_k, d_model, d_k, d_v, mask_cols, has_mask,
            jnp.dtype(attn_dtype).itemsize, budget=vmem_limit // 2)
        if block_b is None:
            block_b = sel_b
        if block_h is None:
            block_h = sel_h
    assert sz_b % block_b == 0 and n_head % block_h == 0
    head_blocks = n_head // block_h
    grid = (sz_b // block_b, head_blocks)

    kernel = functools.partial(
        mha_kernel, d_k=d_k, d_v=d_v, block_h=block_h, head_blocks=head_blocks,
        has_mask=has_mask, compute_dtype=compute_dtype)

    out_shape = (
        jax.ShapeDtypeStruct((sz_b, len_q, d_model), jnp.float32),
        jax.ShapeDtypeStruct((sz_b, n_head, len_q, len_k), attn_dtype),
    )

    in_specs = [
        pl.BlockSpec((block_b, len_q, d_model), lambda b, hb: (b, 0, 0)),    # q
        pl.BlockSpec((block_b, len_k, d_model), lambda b, hb: (b, 0, 0)),    # k
        pl.BlockSpec((block_b, len_k, d_model), lambda b, hb: (b, 0, 0)),    # v
    ]
    args = [q, k, v]
    if has_mask:
        in_specs.append(
            pl.BlockSpec((block_b, len_q, mask_cols), lambda b, hb: (b, 0, 0)))
        args.append(mask_arr)
    # Weights: full-array + constant index map -> DMA'd once, VMEM-resident.
    # TODO(synk): fall back to per-head-block weight BlockSpecs if the bf16
    #             weights themselves outgrow the VMEM budget (very large d_model).
    in_specs += [
        pl.BlockSpec((n_head, d_model, d_k), lambda b, hb: (0, 0, 0)),       # w_qs
        pl.BlockSpec((n_head, d_model, d_k), lambda b, hb: (0, 0, 0)),       # w_ks
        pl.BlockSpec((n_head, d_model, d_v), lambda b, hb: (0, 0, 0)),       # w_vs
        pl.BlockSpec((n_head * d_v, d_model), lambda b, hb: (0, 0)),         # fc
        pl.BlockSpec((1, d_model), lambda b, hb: (0, 0)),                    # ln gamma
        pl.BlockSpec((1, d_model), lambda b, hb: (0, 0)),                    # ln beta
    ]
    args += [wq_h, wk_h, wv_h, wfc_c, gamma2, beta2]

    out_specs = (
        # output block constant across the head axis -> VMEM-resident accumulator
        pl.BlockSpec((block_b, len_q, d_model), lambda b, hb: (b, 0, 0)),
        pl.BlockSpec((block_b, block_h, len_q, len_k), lambda b, hb: (b, hb, 0, 0)),
    )

    scratch_shapes = [
        pltpu.VMEM((block_b, len_q, d_model), compute_dtype),            # bf16 q
        pltpu.VMEM((block_b, len_k, d_model), compute_dtype),            # bf16 k
        pltpu.VMEM((block_b, len_k, d_model), compute_dtype),            # bf16 v
        pltpu.VMEM((block_b * len_q, block_h * d_v), compute_dtype),     # fc operand
    ]
    if has_mask:
        scratch_shapes.append(
            pltpu.VMEM((block_b, len_q, mask_cols), jnp.float32))        # -1e9 bias

    return pl.pallas_call(
        kernel,
        out_shape=out_shape,
        grid=grid,
        in_specs=in_specs,
        out_specs=out_specs,
        scratch_shapes=scratch_shapes,
        compiler_params=pltpu.CompilerParams(
            dimension_semantics=("parallel", "arbitrary"),
            vmem_limit_bytes=vmem_limit),
    )(*args)


def _reference(q, k, v, mask, params, *, n_head, d_k, d_v):
    """Pure-JAX f32 reference mirroring the PyTorch forward (eval mode)."""
    wq, wk, wv, wfc, gamma, beta = params
    sz_b, len_q, d_model = q.shape
    len_k = k.shape[1]
    residual = q
    Q = (q @ wq).reshape(sz_b, len_q, n_head, d_k).transpose(0, 2, 1, 3)
    K = (k @ wk).reshape(sz_b, len_k, n_head, d_k).transpose(0, 2, 1, 3)
    V = (v @ wv).reshape(sz_b, len_k, n_head, d_v).transpose(0, 2, 1, 3)
    attn = jnp.einsum("bhqd,bhkd->bhqk", Q / (d_k ** 0.5), K)
    if mask is not None:
        m = mask[:, None, :, :]
        attn = jnp.where(m == 0, -1e9, attn)
    attn = jax.nn.softmax(attn, axis=-1)
    out = jnp.einsum("bhqk,bhkd->bhqd", attn, V)
    out = out.transpose(0, 2, 1, 3).reshape(sz_b, len_q, n_head * d_v)
    out = out @ wfc + residual
    mean = out.mean(-1, keepdims=True)
    var = ((out - mean) ** 2).mean(-1, keepdims=True)
    out = (out - mean) / jnp.sqrt(var + 1e-6) * gamma + beta
    return out, attn


if __name__ == "__main__":
    # Small shapes consistent with the module's forward.
    SZ_B, SEQ, D_MODEL = 2, 8, 32
    N_HEAD, D_K, D_V = 4, 8, 8

    key = jax.random.PRNGKey(0)
    k_q, k_k, k_v, k_wq, k_wk, k_wv, k_fc = jax.random.split(key, 7)

    q = jax.random.normal(k_q, (SZ_B, SEQ, D_MODEL), jnp.float32)
    k = jax.random.normal(k_k, (SZ_B, SEQ, D_MODEL), jnp.float32)
    v = jax.random.normal(k_v, (SZ_B, SEQ, D_MODEL), jnp.float32)

    # Deterministic parameter init (Linear weights stored as (in, out), no bias).
    def init_w(kk, fan_in, fan_out):
        bound = 1.0 / (fan_in ** 0.5)
        return jax.random.uniform(kk, (fan_in, fan_out), jnp.float32, -bound, bound)

    wq = init_w(k_wq, D_MODEL, N_HEAD * D_K)
    wk = init_w(k_wk, D_MODEL, N_HEAD * D_K)
    wv = init_w(k_wv, D_MODEL, N_HEAD * D_V)
    wfc = init_w(k_fc, N_HEAD * D_V, D_MODEL)
    gamma = jnp.ones((D_MODEL,), jnp.float32)    # nn.LayerNorm default weight
    beta = jnp.zeros((D_MODEL,), jnp.float32)    # nn.LayerNorm default bias
    params = (wq, wk, wv, wfc, gamma, beta)

    # One-time parameter prep (head-major bf16 weights, scale folded into w_q).
    prepared = prepare_params(params, n_head=N_HEAD, d_k=D_K, d_v=D_V)

    mask_enc = jnp.ones((SZ_B, SEQ, 1), jnp.float32).at[:, -1, :].set(0.0)
    mask_dec = jnp.broadcast_to(jnp.tril(jnp.ones((SEQ, SEQ), jnp.float32)),
                                (SZ_B, SEQ, SEQ))

    for name, mask in (("no-mask", None), ("encoder", mask_enc), ("decoder", mask_dec)):
        out, attn = multi_head_attention(q, k, v, mask, prepared,
                                         n_head=N_HEAD, d_k=D_K, d_v=D_V)
        jax.block_until_ready((out, attn))
        out_ref, attn_ref = _reference(q, k, v, mask, params,
                                       n_head=N_HEAD, d_k=D_K, d_v=D_V)
        # Tolerance accounts for bf16 matmul operands and bf16-stored attn probs
        # (softmax / LayerNorm stay f32).
        assert jnp.allclose(out, out_ref, rtol=2e-2, atol=2e-2), name
        assert jnp.allclose(attn.astype(jnp.float32), attn_ref,
                            rtol=2e-2, atol=2e-2), name

    print("KERNEL_OK")
</pallas_src>

<mosaic_0001>
module attributes {stable_mosaic.version = 11 : i64} {
  func.func @mha_kernel(%arg0: i32, %arg1: i32, %arg2: memref<1x8x32xf32, #tpu.memory_space<vmem>>, %arg3: memref<1x8x32xf32, #tpu.memory_space<vmem>>, %arg4: memref<1x8x32xf32, #tpu.memory_space<vmem>>, %arg5: memref<4x32x8xbf16, #tpu.memory_space<vmem>>, %arg6: memref<4x32x8xbf16, #tpu.memory_space<vmem>>, %arg7: memref<4x32x8xbf16, #tpu.memory_space<vmem>>, %arg8: memref<32x32xbf16, #tpu.memory_space<vmem>>, %arg9: memref<1x32xf32, #tpu.memory_space<vmem>>, %arg10: memref<1x32xf32, #tpu.memory_space<vmem>>, %arg11: memref<1x8x32xf32, #tpu.memory_space<vmem>>, %arg12: memref<1x4x8x8xbf16, #tpu.memory_space<vmem>>, %arg13: memref<1x8x32xbf16, #tpu.memory_space<vmem>>, %arg14: memref<1x8x32xbf16, #tpu.memory_space<vmem>>, %arg15: memref<1x8x32xbf16, #tpu.memory_space<vmem>>, %arg16: memref<8x32xbf16, #tpu.memory_space<vmem>>) attributes {dimension_semantics = [#tpu.dimension_semantics<parallel>, #tpu.dimension_semantics<arbitrary>], iteration_bounds = array<i64: 2, 1>, scalar_prefetch = 0 : i64, scratch_operands = 4 : i64, tpu.core_type = #tpu.core_type<tc>, window_params = [{transform_indices = @transform_0, window_bounds = array<i64: 1, 8, 32>}, {transform_indices = @transform_1, window_bounds = array<i64: 1, 8, 32>}, {transform_indices = @transform_2, window_bounds = array<i64: 1, 8, 32>}, {pipeline_mode = #tpu.pipeline_mode<synchronous>, transform_indices = @transform_3, window_bounds = array<i64: 4, 32, 8>}, {pipeline_mode = #tpu.pipeline_mode<synchronous>, transform_indices = @transform_4, window_bounds = array<i64: 4, 32, 8>}, {pipeline_mode = #tpu.pipeline_mode<synchronous>, transform_indices = @transform_5, window_bounds = array<i64: 4, 32, 8>}, {pipeline_mode = #tpu.pipeline_mode<synchronous>, transform_indices = @transform_6, window_bounds = array<i64: 32, 32>}, {pipeline_mode = #tpu.pipeline_mode<synchronous>, transform_indices = @transform_7, window_bounds = array<i64: 1, 32>}, {pipeline_mode = #tpu.pipeline_mode<synchronous>, transform_indices = @transform_8, window_bounds = array<i64: 1, 32>}, {transform_indices = @transform_9, window_bounds = array<i64: 1, 8, 32>}, {transform_indices = @transform_10, window_bounds = array<i64: 1, 4, 8, 8>}]} {
    %c0_i32 = arith.constant 0 : i32
    %0 = arith.cmpi eq, %arg1, %c0_i32 : i32
    %1 = arith.extui %0 : i1 to i32
    %c0_i32_0 = arith.constant 0 : i32
    %2 = arith.cmpi ne, %1, %c0_i32_0 : i32
    scf.if %2 {
      %c0_110 = arith.constant 0 : index
      %c0_111 = arith.constant 0 : index
      %c0_112 = arith.constant 0 : index
      %182 = vector.load %arg2[%c0_110, %c0_111, %c0_112] : memref<1x8x32xf32, #tpu.memory_space<vmem>>, vector<1x8x32xf32>
      %183 = arith.truncf %182 : vector<1x8x32xf32> to vector<1x8x32xbf16>
      %c0_113 = arith.constant 0 : index
      %c0_114 = arith.constant 0 : index
      %c0_115 = arith.constant 0 : index
      %184 = vector.load %arg13[%c0_113, %c0_114, %c0_115] : memref<1x8x32xbf16, #tpu.memory_space<vmem>>, vector<1x8x32xbf16>
      tpu.vector_store %arg13[%c0_113, %c0_114, %c0_115], %183 {strides = array<i32>} : memref<1x8x32xbf16, #tpu.memory_space<vmem>>, vector<1x8x32xbf16>,
      %c0_116 = arith.constant 0 : index
      %c0_117 = arith.constant 0 : index
      %c0_118 = arith.constant 0 : index
      %185 = vector.load %arg3[%c0_116, %c0_117, %c0_118] : memref<1x8x32xf32, #tpu.memory_space<vmem>>, vector<1x8x32xf32>
      %186 = arith.truncf %185 : vector<1x8x32xf32> to vector<1x8x32xbf16>
      %c0_119 = arith.constant 0 : index
      %c0_120 = arith.constant 0 : index
      %c0_121 = arith.constant 0 : index
      %187 = vector.load %arg14[%c0_119, %c0_120, %c0_121] : memref<1x8x32xbf16, #tpu.memory_space<vmem>>, vector<1x8x32xbf16>
      tpu.vector_store %arg14[%c0_119, %c0_120, %c0_121], %186 {strides = array<i32>} : memref<1x8x32xbf16, #tpu.memory_space<vmem>>, vector<1x8x32xbf16>,
      %c0_122 = arith.constant 0 : index
      %c0_123 = arith.constant 0 : index
      %c0_124 = arith.constant 0 : index
      %188 = vector.load %arg4[%c0_122, %c0_123, %c0_124] : memref<1x8x32xf32, #tpu.memory_space<vmem>>, vector<1x8x32xf32>
      %189 = arith.truncf %188 : vector<1x8x32xf32> to vector<1x8x32xbf16>
      %c0_125 = arith.constant 0 : index
      %c0_126 = arith.constant 0 : index
      %c0_127 = arith.constant 0 : index
      %190 = vector.load %arg15[%c0_125, %c0_126, %c0_127] : memref<1x8x32xbf16, #tpu.memory_space<vmem>>, vector<1x8x32xbf16>
      tpu.vector_store %arg15[%c0_125, %c0_126, %c0_127], %189 {strides = array<i32>} : memref<1x8x32xbf16, #tpu.memory_space<vmem>>, vector<1x8x32xbf16>,
    } else {
    }
    %c0 = arith.constant 0 : index
    %c0_1 = arith.constant 0 : index
    %c0_2 = arith.constant 0 : index
    %3 = vector.load %arg13[%c0, %c0_1, %c0_2] : memref<1x8x32xbf16, #tpu.memory_space<vmem>>, vector<1x8x32xbf16>
    %4 = vector.shape_cast %3 : vector<1x8x32xbf16> to vector<8x32xbf16>
    %c0_3 = arith.constant 0 : index
    %c0_4 = arith.constant 0 : index
    %c0_5 = arith.constant 0 : index
    %5 = vector.load %arg14[%c0_3, %c0_4, %c0_5] : memref<1x8x32xbf16, #tpu.memory_space<vmem>>, vector<1x8x32xbf16>
    %6 = vector.shape_cast %5 : vector<1x8x32xbf16> to vector<8x32xbf16>
    %c0_6 = arith.constant 0 : index
    %c0_7 = arith.constant 0 : index
    %c0_8 = arith.constant 0 : index
    %7 = vector.load %arg15[%c0_6, %c0_7, %c0_8] : memref<1x8x32xbf16, #tpu.memory_space<vmem>>, vector<1x8x32xbf16>
    %8 = vector.shape_cast %7 : vector<1x8x32xbf16> to vector<8x32xbf16>
    %c0_9 = arith.constant 0 : index
    %c0_10 = arith.constant 0 : index
    %c0_11 = arith.constant 0 : index
    %9 = vector.load %arg5[%c0_9, %c0_10, %c0_11] : memref<4x32x8xbf16, #tpu.memory_space<vmem>>, vector<1x32x8xbf16>
    %10 = vector.shape_cast %9 : vector<1x32x8xbf16> to vector<32x8xbf16>
    %cst = arith.constant dense<0.000000e+00> : vector<8x8xf32>
    %11 = tpu.matmul %4, %10, %cst {dimension_numbers = #tpu.dot_dimension_numbers<[1], [0], [0], [1], [0, 0, 1, 1], [], []>} : vector<8x32xbf16>, vector<32x8xbf16>, vector<8x8xf32> -> vector<8x8xf32>
    %c0_12 = arith.constant 0 : index
    %c0_13 = arith.constant 0 : index
    %c0_14 = arith.constant 0 : index
    %12 = vector.load %arg6[%c0_12, %c0_13, %c0_14] : memref<4x32x8xbf16, #tpu.memory_space<vmem>>, vector<1x32x8xbf16>
    %13 = vector.shape_cast %12 : vector<1x32x8xbf16> to vector<32x8xbf16>
    %cst_15 = arith.constant dense<0.000000e+00> : vector<8x8xf32>
    %14 = tpu.matmul %6, %13, %cst_15 {dimension_numbers = #tpu.dot_dimension_numbers<[1], [0], [0], [1], [0, 0, 1, 1], [], []>} : vector<8x32xbf16>, vector<32x8xbf16>, vector<8x8xf32> -> vector<8x8xf32>
    %c0_16 = arith.constant 0 : index
    %c0_17 = arith.constant 0 : index
    %c0_18 = arith.constant 0 : index
    %15 = vector.load %arg7[%c0_16, %c0_17, %c0_18] : memref<4x32x8xbf16, #tpu.memory_space<vmem>>, vector<1x32x8xbf16>
    %16 = vector.shape_cast %15 : vector<1x32x8xbf16> to vector<32x8xbf16>
    %cst_19 = arith.constant dense<0.000000e+00> : vector<8x8xf32>
    %17 = tpu.matmul %8, %16, %cst_19 {dimension_numbers = #tpu.dot_dimension_numbers<[1], [0], [0], [1], [0, 0, 1, 1], [], []>} : vector<8x32xbf16>, vector<32x8xbf16>, vector<8x8xf32> -> vector<8x8xf32>
    %18 = vector.shape_cast %11 : vector<8x8xf32> to vector<1x8x8xf32>
    %19 = arith.truncf %18 : vector<1x8x8xf32> to vector<1x8x8xbf16>
    %20 = vector.shape_cast %14 : vector<8x8xf32> to vector<1x8x8xf32>
    %21 = arith.truncf %20 : vector<1x8x8xf32> to vector<1x8x8xbf16>
    "tpu.trace_start"() <{level = 10 : i32, message = "bqd,bkd->bqk"}> : () -> ()
    %cst_20 = arith.constant dense<0.000000e+00> : vector<1x8x8xf32>
    %22 = tpu.matmul %19, %21, %cst_20 {dimension_numbers = #tpu.dot_dimension_numbers<[2], [2], [1], [1], [0, 0, 0, 1, 1, 1], [0], [0]>} : vector<1x8x8xbf16>, vector<1x8x8xbf16>, vector<1x8x8xf32> -> vector<1x8x8xf32>
    "tpu.trace_stop"() : () -> ()
    %cst_21 = arith.constant dense<0xFF800000> : vector<1x8xf32>
    %23 = vector.multi_reduction <maximumf>, %22, %cst_21 [2] : vector<1x8x8xf32> to vector<1x8xf32>
    %24 = vector.shape_cast %23 : vector<1x8xf32> to vector<1x8x1xf32>
    %25 = vector.broadcast %24 : vector<1x8x1xf32> to vector<1x8x8xf32>
    %26 = arith.subf %22, %25 : vector<1x8x8xf32>
    %27 = math.exp %26 : vector<1x8x8xf32>
    %cst_22 = arith.constant dense<0.000000e+00> : vector<1x8xf32>
    %28 = vector.multi_reduction <add>, %27, %cst_22 [2] : vector<1x8x8xf32> to vector<1x8xf32>
    %29 = vector.shape_cast %28 : vector<1x8xf32> to vector<1x8x1xf32>
    %30 = tpu.reciprocal %29 {approx = true} : vector<1x8x1xf32> -> vector<1x8x1xf32>
    %31 = vector.broadcast %30 : vector<1x8x1xf32> to vector<1x8x8xf32>
    %32 = arith.mulf %27, %31 : vector<1x8x8xf32>
    %33 = arith.truncf %32 : vector<1x8x8xf32> to vector<1x8x8xbf16>
    %c0_23 = arith.constant 0 : index
    %c0_24 = arith.constant 0 : index
    %c0_25 = arith.constant 0 : index
    %c0_26 = arith.constant 0 : index
    %34 = vector.load %arg12[%c0_23, %c0_24, %c0_25, %c0_26] : memref<1x4x8x8xbf16, #tpu.memory_space<vmem>>, vector<1x1x8x8xbf16>
    %35 = vector.shape_cast %34 : vector<1x1x8x8xbf16> to vector<1x8x8xbf16>
    %36 = vector.shape_cast %33 : vector<1x8x8xbf16> to vector<1x1x8x8xbf16>
    tpu.vector_store %arg12[%c0_23, %c0_24, %c0_25, %c0_26], %36 {strides = array<i32>} : memref<1x4x8x8xbf16, #tpu.memory_space<vmem>>, vector<1x1x8x8xbf16>,
    %37 = arith.truncf %32 : vector<1x8x8xf32> to vector<1x8x8xbf16>
    %38 = vector.shape_cast %17 : vector<8x8xf32> to vector<1x8x8xf32>
    %39 = arith.truncf %38 : vector<1x8x8xf32> to vector<1x8x8xbf16>
    "tpu.trace_start"() <{level = 10 : i32, message = "bqk,bkd->bqd"}> : () -> ()
    %cst_27 = arith.constant dense<0.000000e+00> : vector<1x8x8xf32>
    %40 = tpu.matmul %37, %39, %cst_27 {dimension_numbers = #tpu.dot_dimension_numbers<[2], [1], [1], [2], [0, 0, 0, 1, 1, 2], [0], [0]>} : vector<1x8x8xbf16>, vector<1x8x8xbf16>, vector<1x8x8xf32> -> vector<1x8x8xf32>
    "tpu.trace_stop"() : () -> ()
    %41 = vector.shape_cast %40 : vector<1x8x8xf32> to vector<8x8xf32>
    %42 = arith.truncf %41 : vector<8x8xf32> to vector<8x8xbf16>
    %c0_28 = arith.constant 0 : index
    %c0_29 = arith.constant 0 : index
    %43 = vector.load %arg16[%c0_28, %c0_29] : memref<8x32xbf16, #tpu.memory_space<vmem>>, vector<8x8xbf16>
    tpu.vector_store %arg16[%c0_28, %c0_29], %42 {strides = array<i32>} : memref<8x32xbf16, #tpu.memory_space<vmem>>, vector<8x8xbf16>,
    %c1 = arith.constant 1 : index
    %c0_30 = arith.constant 0 : index
    %c0_31 = arith.constant 0 : index
    %44 = vector.load %arg5[%c1, %c0_30, %c0_31] : memref<4x32x8xbf16, #tpu.memory_space<vmem>>, vector<1x32x8xbf16>
    %45 = vector.shape_cast %44 : vector<1x32x8xbf16> to vector<32x8xbf16>
    %cst_32 = arith.constant dense<0.000000e+00> : vector<8x8xf32>
    %46 = tpu.matmul %4, %45, %cst_32 {dimension_numbers = #tpu.dot_dimension_numbers<[1], [0], [0], [1], [0, 0, 1, 1], [], []>} : vector<8x32xbf16>, vector<32x8xbf16>, vector<8x8xf32> -> vector<8x8xf32>
    %c1_33 = arith.constant 1 : index
    %c0_34 = arith.constant 0 : index
    %c0_35 = arith.constant 0 : index
    %47 = vector.load %arg6[%c1_33, %c0_34, %c0_35] : memref<4x32x8xbf16, #tpu.memory_space<vmem>>, vector<1x32x8xbf16>
    %48 = vector.shape_cast %47 : vector<1x32x8xbf16> to vector<32x8xbf16>
    %cst_36 = arith.constant dense<0.000000e+00> : vector<8x8xf32>
    %49 = tpu.matmul %6, %48, %cst_36 {dimension_numbers = #tpu.dot_dimension_numbers<[1], [0], [0], [1], [0, 0, 1, 1], [], []>} : vector<8x32xbf16>, vector<32x8xbf16>, vector<8x8xf32> -> vector<8x8xf32>
    %c1_37 = arith.constant 1 : index
    %c0_38 = arith.constant 0 : index
    %c0_39 = arith.constant 0 : index
    %50 = vector.load %arg7[%c1_37, %c0_38, %c0_39] : memref<4x32x8xbf16, #tpu.memory_space<vmem>>, vector<1x32x8xbf16>
    %51 = vector.shape_cast %50 : vector<1x32x8xbf16> to vector<32x8xbf16>
    %cst_40 = arith.constant dense<0.000000e+00> : vector<8x8xf32>
    %52 = tpu.matmul %8, %51, %cst_40 {dimension_numbers = #tpu.dot_dimension_numbers<[1], [0], [0], [1], [0, 0, 1, 1], [], []>} : vector<8x32xbf16>, vector<32x8xbf16>, vector<8x8xf32> -> vector<8x8xf32>
    %53 = vector.shape_cast %46 : vector<8x8xf32> to vector<1x8x8xf32>
    %54 = arith.truncf %53 : vector<1x8x8xf32> to vector<1x8x8xbf16>
    %55 = vector.shape_cast %49 : vector<8x8xf32> to vector<1x8x8xf32>
    %56 = arith.truncf %55 : vector<1x8x8xf32> to vector<1x8x8xbf16>
    "tpu.trace_start"() <{level = 10 : i32, message = "bqd,bkd->bqk"}> : () -> ()
    %cst_41 = arith.constant dense<0.000000e+00> : vector<1x8x8xf32>
    %57 = tpu.matmul %54, %56, %cst_41 {dimension_numbers = #tpu.dot_dimension_numbers<[2], [2], [1], [1], [0, 0, 0, 1, 1, 1], [0], [0]>} : vector<1x8x8xbf16>, vector<1x8x8xbf16>, vector<1x8x8xf32> -> vector<1x8x8xf32>
    "tpu.trace_stop"() : () -> ()
    %cst_42 = arith.constant dense<0xFF800000> : vector<1x8xf32>
    %58 = vector.multi_reduction <maximumf>, %57, %cst_42 [2] : vector<1x8x8xf32> to vector<1x8xf32>
    %59 = vector.shape_cast %58 : vector<1x8xf32> to vector<1x8x1xf32>
    %60 = vector.broadcast %59 : vector<1x8x1xf32> to vector<1x8x8xf32>
    %61 = arith.subf %57, %60 : vector<1x8x8xf32>
    %62 = math.exp %61 : vector<1x8x8xf32>
    %cst_43 = arith.constant dense<0.000000e+00> : vector<1x8xf32>
    %63 = vector.multi_reduction <add>, %62, %cst_43 [2] : vector<1x8x8xf32> to vector<1x8xf32>
    %64 = vector.shape_cast %63 : vector<1x8xf32> to vector<1x8x1xf32>
    %65 = tpu.reciprocal %64 {approx = true} : vector<1x8x1xf32> -> vector<1x8x1xf32>
    %66 = vector.broadcast %65 : vector<1x8x1xf32> to vector<1x8x8xf32>
    %67 = arith.mulf %62, %66 : vector<1x8x8xf32>
    %68 = arith.truncf %67 : vector<1x8x8xf32> to vector<1x8x8xbf16>
    %c0_44 = arith.constant 0 : index
    %c1_45 = arith.constant 1 : index
    %c0_46 = arith.constant 0 : index
    %c0_47 = arith.constant 0 : index
    %69 = vector.load %arg12[%c0_44, %c1_45, %c0_46, %c0_47] : memref<1x4x8x8xbf16, #tpu.memory_space<vmem>>, vector<1x1x8x8xbf16>
    %70 = vector.shape_cast %69 : vector<1x1x8x8xbf16> to vector<1x8x8xbf16>
    %71 = vector.shape_cast %68 : vector<1x8x8xbf16> to vector<1x1x8x8xbf16>
    tpu.vector_store %arg12[%c0_44, %c1_45, %c0_46, %c0_47], %71 {strides = array<i32>} : memref<1x4x8x8xbf16, #tpu.memory_space<vmem>>, vector<1x1x8x8xbf16>,
    %72 = arith.truncf %67 : vector<1x8x8xf32> to vector<1x8x8xbf16>
    %73 = vector.shape_cast %52 : vector<8x8xf32> to vector<1x8x8xf32>
    %74 = arith.truncf %73 : vector<1x8x8xf32> to vector<1x8x8xbf16>
    "tpu.trace_start"() <{level = 10 : i32, message = "bqk,bkd->bqd"}> : () -> ()
    %cst_48 = arith.constant dense<0.000000e+00> : vector<1x8x8xf32>
    %75 = tpu.matmul %72, %74, %cst_48 {dimension_numbers = #tpu.dot_dimension_numbers<[2], [1], [1], [2], [0, 0, 0, 1, 1, 2], [0], [0]>} : vector<1x8x8xbf16>, vector<1x8x8xbf16>, vector<1x8x8xf32> -> vector<1x8x8xf32>
    "tpu.trace_stop"() : () -> ()
    %76 = vector.shape_cast %75 : vector<1x8x8xf32> to vector<8x8xf32>
    %77 = arith.truncf %76 : vector<8x8xf32> to vector<8x8xbf16>
    %c0_49 = arith.constant 0 : index
    %c8 = arith.constant 8 : index
    %78 = vector.load %arg16[%c0_49, %c8] : memref<8x32xbf16, #tpu.memory_space<vmem>>, vector<8x8xbf16>
    tpu.vector_store %arg16[%c0_49, %c8], %77 {strides = array<i32>} : memref<8x32xbf16, #tpu.memory_space<vmem>>, vector<8x8xbf16>,
    %c2 = arith.constant 2 : index
    %c0_50 = arith.constant 0 : index
    %c0_51 = arith.constant 0 : index
    %79 = vector.load %arg5[%c2, %c0_50, %c0_51] : memref<4x32x8xbf16, #tpu.memory_space<vmem>>, vector<1x32x8xbf16>
    %80 = vector.shape_cast %79 : vector<1x32x8xbf16> to vector<32x8xbf16>
    %cst_52 = arith.constant dense<0.000000e+00> : vector<8x8xf32>
    %81 = tpu.matmul %4, %80, %cst_52 {dimension_numbers = #tpu.dot_dimension_numbers<[1], [0], [0], [1], [0, 0, 1, 1], [], []>} : vector<8x32xbf16>, vector<32x8xbf16>, vector<8x8xf32> -> vector<8x8xf32>
    %c2_53 = arith.constant 2 : index
    %c0_54 = arith.constant 0 : index
    %c0_55 = arith.constant 0 : index
    %82 = vector.load %arg6[%c2_53, %c0_54, %c0_55] : memref<4x32x8xbf16, #tpu.memory_space<vmem>>, vector<1x32x8xbf16>
    %83 = vector.shape_cast %82 : vector<1x32x8xbf16> to vector<32x8xbf16>
    %cst_56 = arith.constant dense<0.000000e+00> : vector<8x8xf32>
    %84 = tpu.matmul %6, %83, %cst_56 {dimension_numbers = #tpu.dot_dimension_numbers<[1], [0], [0], [1], [0, 0, 1, 1], [], []>} : vector<8x32xbf16>, vector<32x8xbf16>, vector<8x8xf32> -> vector<8x8xf32>
    %c2_57 = arith.constant 2 : index
    %c0_58 = arith.constant 0 : index
    %c0_59 = arith.constant 0 : index
    %85 = vector.load %arg7[%c2_57, %c0_58, %c0_59] : memref<4x32x8xbf16, #tpu.memory_space<vmem>>, vector<1x32x8xbf16>
    %86 = vector.shape_cast %85 : vector<1x32x8xbf16> to vector<32x8xbf16>
    %cst_60 = arith.constant dense<0.000000e+00> : vector<8x8xf32>
    %87 = tpu.matmul %8, %86, %cst_60 {dimension_numbers = #tpu.dot_dimension_numbers<[1], [0], [0], [1], [0, 0, 1, 1], [], []>} : vector<8x32xbf16>, vector<32x8xbf16>, vector<8x8xf32> -> vector<8x8xf32>
    %88 = vector.shape_cast %81 : vector<8x8xf32> to vector<1x8x8xf32>
    %89 = arith.truncf %88 : vector<1x8x8xf32> to vector<1x8x8xbf16>
    %90 = vector.shape_cast %84 : vector<8x8xf32> to vector<1x8x8xf32>
    %91 = arith.truncf %90 : vector<1x8x8xf32> to vector<1x8x8xbf16>
    "tpu.trace_start"() <{level = 10 : i32, message = "bqd,bkd->bqk"}> : () -> ()
    %cst_61 = arith.constant dense<0.000000e+00> : vector<1x8x8xf32>
    %92 = tpu.matmul %89, %91, %cst_61 {dimension_numbers = #tpu.dot_dimension_numbers<[2], [2], [1], [1], [0, 0, 0, 1, 1, 1], [0], [0]>} : vector<1x8x8xbf16>, vector<1x8x8xbf16>, vector<1x8x8xf32> -> vector<1x8x8xf32>
    "tpu.trace_stop"() : () -> ()
    %cst_62 = arith.constant dense<0xFF800000> : vector<1x8xf32>
    %93 = vector.multi_reduction <maximumf>, %92, %cst_62 [2] : vector<1x8x8xf32> to vector<1x8xf32>
    %94 = vector.shape_cast %93 : vector<1x8xf32> to vector<1x8x1xf32>
    %95 = vector.broadcast %94 : vector<1x8x1xf32> to vector<1x8x8xf32>
    %96 = arith.subf %92, %95 : vector<1x8x8xf32>
    %97 = math.exp %96 : vector<1x8x8xf32>
    %cst_63 = arith.constant dense<0.000000e+00> : vector<1x8xf32>
    %98 = vector.multi_reduction <add>, %97, %cst_63 [2] : vector<1x8x8xf32> to vector<1x8xf32>
    %99 = vector.shape_cast %98 : vector<1x8xf32> to vector<1x8x1xf32>
    %100 = tpu.reciprocal %99 {approx = true} : vector<1x8x1xf32> -> vector<1x8x1xf32>
    %101 = vector.broadcast %100 : vector<1x8x1xf32> to vector<1x8x8xf32>
    %102 = arith.mulf %97, %101 : vector<1x8x8xf32>
    %103 = arith.truncf %102 : vector<1x8x8xf32> to vector<1x8x8xbf16>
    %c0_64 = arith.constant 0 : index
    %c2_65 = arith.constant 2 : index
    %c0_66 = arith.constant 0 : index
    %c0_67 = arith.constant 0 : index
    %104 = vector.load %arg12[%c0_64, %c2_65, %c0_66, %c0_67] : memref<1x4x8x8xbf16, #tpu.memory_space<vmem>>, vector<1x1x8x8xbf16>
    %105 = vector.shape_cast %104 : vector<1x1x8x8xbf16> to vector<1x8x8xbf16>
    %106 = vector.shape_cast %103 : vector<1x8x8xbf16> to vector<1x1x8x8xbf16>
    tpu.vector_store %arg12[%c0_64, %c2_65, %c0_66, %c0_67], %106 {strides = array<i32>} : memref<1x4x8x8xbf16, #tpu.memory_space<vmem>>, vector<1x1x8x8xbf16>,
    %107 = arith.truncf %102 : vector<1x8x8xf32> to vector<1x8x8xbf16>
    %108 = vector.shape_cast %87 : vector<8x8xf32> to vector<1x8x8xf32>
    %109 = arith.truncf %108 : vector<1x8x8xf32> to vector<1x8x8xbf16>
    "tpu.trace_start"() <{level = 10 : i32, message = "bqk,bkd->bqd"}> : () -> ()
    %cst_68 = arith.constant dense<0.000000e+00> : vector<1x8x8xf32>
    %110 = tpu.matmul %107, %109, %cst_68 {dimension_numbers = #tpu.dot_dimension_numbers<[2], [1], [1], [2], [0, 0, 0, 1, 1, 2], [0], [0]>} : vector<1x8x8xbf16>, vector<1x8x8xbf16>, vector<1x8x8xf32> -> vector<1x8x8xf32>
    "tpu.trace_stop"() : () -> ()
    %111 = vector.shape_cast %110 : vector<1x8x8xf32> to vector<8x8xf32>
    %112 = arith.truncf %111 : vector<8x8xf32> to vector<8x8xbf16>
    %c0_69 = arith.constant 0 : index
    %c16 = arith.constant 16 : index
    %113 = vector.load %arg16[%c0_69, %c16] : memref<8x32xbf16, #tpu.memory_space<vmem>>, vector<8x8xbf16>
    tpu.vector_store %arg16[%c0_69, %c16], %112 {strides = array<i32>} : memref<8x32xbf16, #tpu.memory_space<vmem>>, vector<8x8xbf16>,
    %c3 = arith.constant 3 : index
    %c0_70 = arith.constant 0 : index
    %c0_71 = arith.constant 0 : index
    %114 = vector.load %arg5[%c3, %c0_70, %c0_71] : memref<4x32x8xbf16, #tpu.memory_space<vmem>>, vector<1x32x8xbf16>
    %115 = vector.shape_cast %114 : vector<1x32x8xbf16> to vector<32x8xbf16>
    %cst_72 = arith.constant dense<0.000000e+00> : vector<8x8xf32>
    %116 = tpu.matmul %4, %115, %cst_72 {dimension_numbers = #tpu.dot_dimension_numbers<[1], [0], [0], [1], [0, 0, 1, 1], [], []>} : vector<8x32xbf16>, vector<32x8xbf16>, vector<8x8xf32> -> vector<8x8xf32>
    %c3_73 = arith.constant 3 : index
    %c0_74 = arith.constant 0 : index
    %c0_75 = arith.constant 0 : index
    %117 = vector.load %arg6[%c3_73, %c0_74, %c0_75] : memref<4x32x8xbf16, #tpu.memory_space<vmem>>, vector<1x32x8xbf16>
    %118 = vector.shape_cast %117 : vector<1x32x8xbf16> to vector<32x8xbf16>
    %cst_76 = arith.constant dense<0.000000e+00> : vector<8x8xf32>
    %119 = tpu.matmul %6, %118, %cst_76 {dimension_numbers = #tpu.dot_dimension_numbers<[1], [0], [0], [1], [0, 0, 1, 1], [], []>} : vector<8x32xbf16>, vector<32x8xbf16>, vector<8x8xf32> -> vector<8x8xf32>
    %c3_77 = arith.constant 3 : index
    %c0_78 = arith.constant 0 : index
    %c0_79 = arith.constant 0 : index
    %120 = vector.load %arg7[%c3_77, %c0_78, %c0_79] : memref<4x32x8xbf16, #tpu.memory_space<vmem>>, vector<1x32x8xbf16>
    %121 = vector.shape_cast %120 : vector<1x32x8xbf16> to vector<32x8xbf16>
    %cst_80 = arith.constant dense<0.000000e+00> : vector<8x8xf32>
    %122 = tpu.matmul %8, %121, %cst_80 {dimension_numbers = #tpu.dot_dimension_numbers<[1], [0], [0], [1], [0, 0, 1, 1], [], []>} : vector<8x32xbf16>, vector<32x8xbf16>, vector<8x8xf32> -> vector<8x8xf32>
    %123 = vector.shape_cast %116 : vector<8x8xf32> to vector<1x8x8xf32>
    %124 = arith.truncf %123 : vector<1x8x8xf32> to vector<1x8x8xbf16>
    %125 = vector.shape_cast %119 : vector<8x8xf32> to vector<1x8x8xf32>
    %126 = arith.truncf %125 : vector<1x8x8xf32> to vector<1x8x8xbf16>
    "tpu.trace_start"() <{level = 10 : i32, message = "bqd,bkd->bqk"}> : () -> ()
    %cst_81 = arith.constant dense<0.000000e+00> : vector<1x8x8xf32>
    %127 = tpu.matmul %124, %126, %cst_81 {dimension_numbers = #tpu.dot_dimension_numbers<[2], [2], [1], [1], [0, 0, 0, 1, 1, 1], [0], [0]>} : vector<1x8x8xbf16>, vector<1x8x8xbf16>, vector<1x8x8xf32> -> vector<1x8x8xf32>
    "tpu.trace_stop"() : () -> ()
    %cst_82 = arith.constant dense<0xFF800000> : vector<1x8xf32>
    %128 = vector.multi_reduction <maximumf>, %127, %cst_82 [2] : vector<1x8x8xf32> to vector<1x8xf32>
    %129 = vector.shape_cast %128 : vector<1x8xf32> to vector<1x8x1xf32>
    %130 = vector.broadcast %129 : vector<1x8x1xf32> to vector<1x8x8xf32>
    %131 = arith.subf %127, %130 : vector<1x8x8xf32>
    %132 = math.exp %131 : vector<1x8x8xf32>
    %cst_83 = arith.constant dense<0.000000e+00> : vector<1x8xf32>
    %133 = vector.multi_reduction <add>, %132, %cst_83 [2] : vector<1x8x8xf32> to vector<1x8xf32>
    %134 = vector.shape_cast %133 : vector<1x8xf32> to vector<1x8x1xf32>
    %135 = tpu.reciprocal %134 {approx = true} : vector<1x8x1xf32> -> vector<1x8x1xf32>
    %136 = vector.broadcast %135 : vector<1x8x1xf32> to vector<1x8x8xf32>
    %137 = arith.mulf %132, %136 : vector<1x8x8xf32>
    %138 = arith.truncf %137 : vector<1x8x8xf32> to vector<1x8x8xbf16>
    %c0_84 = arith.constant 0 : index
    %c3_85 = arith.constant 3 : index
    %c0_86 = arith.constant 0 : index
    %c0_87 = arith.constant 0 : index
    %139 = vector.load %arg12[%c0_84, %c3_85, %c0_86, %c0_87] : memref<1x4x8x8xbf16, #tpu.memory_space<vmem>>, vector<1x1x8x8xbf16>
    %140 = vector.shape_cast %139 : vector<1x1x8x8xbf16> to vector<1x8x8xbf16>
    %141 = vector.shape_cast %138 : vector<1x8x8xbf16> to vector<1x1x8x8xbf16>
    tpu.vector_store %arg12[%c0_84, %c3_85, %c0_86, %c0_87], %141 {strides = array<i32>} : memref<1x4x8x8xbf16, #tpu.memory_space<vmem>>, vector<1x1x8x8xbf16>,
    %142 = arith.truncf %137 : vector<1x8x8xf32> to vector<1x8x8xbf16>
    %143 = vector.shape_cast %122 : vector<8x8xf32> to vector<1x8x8xf32>
    %144 = arith.truncf %143 : vector<1x8x8xf32> to vector<1x8x8xbf16>
    "tpu.trace_start"() <{level = 10 : i32, message = "bqk,bkd->bqd"}> : () -> ()
    %cst_88 = arith.constant dense<0.000000e+00> : vector<1x8x8xf32>
    %145 = tpu.matmul %142, %144, %cst_88 {dimension_numbers = #tpu.dot_dimension_numbers<[2], [1], [1], [2], [0, 0, 0, 1, 1, 2], [0], [0]>} : vector<1x8x8xbf16>, vector<1x8x8xbf16>, vector<1x8x8xf32> -> vector<1x8x8xf32>
    "tpu.trace_stop"() : () -> ()
    %146 = vector.shape_cast %145 : vector<1x8x8xf32> to vector<8x8xf32>
    %147 = arith.truncf %146 : vector<8x8xf32> to vector<8x8xbf16>
    %c0_89 = arith.constant 0 : index
    %c24 = arith.constant 24 : index
    %148 = vector.load %arg16[%c0_89, %c24] : memref<8x32xbf16, #tpu.memory_space<vmem>>, vector<8x8xbf16>
    tpu.vector_store %arg16[%c0_89, %c24], %147 {strides = array<i32>} : memref<8x32xbf16, #tpu.memory_space<vmem>>, vector<8x8xbf16>,
    %c0_90 = arith.constant 0 : index
    %c0_91 = arith.constant 0 : index
    %149 = vector.load %arg8[%c0_90, %c0_91] : memref<32x32xbf16, #tpu.memory_space<vmem>>, vector<32x32xbf16>
    %c0_92 = arith.constant 0 : index
    %c0_93 = arith.constant 0 : index
    %150 = vector.load %arg16[%c0_92, %c0_93] : memref<8x32xbf16, #tpu.memory_space<vmem>>, vector<8x32xbf16>
    %cst_94 = arith.constant dense<0.000000e+00> : vector<8x32xf32>
    %151 = tpu.matmul %150, %149, %cst_94 {dimension_numbers = #tpu.dot_dimension_numbers<[1], [0], [0], [1], [0, 0, 1, 1], [], []>} : vector<8x32xbf16>, vector<32x32xbf16>, vector<8x32xf32> -> vector<8x32xf32>
    %152 = vector.shape_cast %151 : vector<8x32xf32> to vector<1x8x32xf32>
    %c0_95 = arith.constant 0 : index
    %c0_96 = arith.constant 0 : index
    %c0_97 = arith.constant 0 : index
    %153 = vector.load %arg2[%c0_95, %c0_96, %c0_97] : memref<1x8x32xf32, #tpu.memory_space<vmem>>, vector<1x8x32xf32>
    %154 = arith.addf %153, %152 : vector<1x8x32xf32>
    %cst_98 = arith.constant dense<0.000000e+00> : vector<1x8xf32>
    %155 = vector.multi_reduction <add>, %154, %cst_98 [2] : vector<1x8x32xf32> to vector<1x8xf32>
    %156 = vector.shape_cast %155 : vector<1x8xf32> to vector<1x8x1xf32>
    %cst_99 = arith.constant 3.200000e+01 : f32
    %157 = vector.broadcast %cst_99 : f32 to vector<1x8x1xf32>
    %158 = arith.divf %156, %157 : vector<1x8x1xf32>
    %159 = vector.broadcast %158 : vector<1x8x1xf32> to vector<1x8x32xf32>
    %160 = arith.subf %154, %159 : vector<1x8x32xf32>
    %161 = arith.mulf %160, %160 : vector<1x8x32xf32>
    %cst_100 = arith.constant dense<0.000000e+00> : vector<1x8xf32>
    %162 = vector.multi_reduction <add>, %161, %cst_100 [2] : vector<1x8x32xf32> to vector<1x8xf32>
    %163 = vector.shape_cast %162 : vector<1x8xf32> to vector<1x8x1xf32>
    %cst_101 = arith.constant 3.200000e+01 : f32
    %164 = vector.broadcast %cst_101 : f32 to vector<1x8x1xf32>
    %165 = arith.divf %163, %164 : vector<1x8x1xf32>
    %166 = vector.broadcast %158 : vector<1x8x1xf32> to vector<1x8x32xf32>
    %167 = arith.subf %154, %166 : vector<1x8x32xf32>
    %cst_102 = arith.constant 9.99999997E-7 : f32
    %168 = vector.broadcast %cst_102 : f32 to vector<1x8x1xf32>
    %169 = arith.addf %165, %168 : vector<1x8x1xf32>
    %170 = math.rsqrt %169 : vector<1x8x1xf32>
    %171 = vector.broadcast %170 : vector<1x8x1xf32> to vector<1x8x32xf32>
    %172 = arith.mulf %167, %171 : vector<1x8x32xf32>
    %c0_103 = arith.constant 0 : index
    %c0_104 = arith.constant 0 : index
    %173 = vector.load %arg9[%c0_103, %c0_104] : memref<1x32xf32, #tpu.memory_space<vmem>>, vector<1x32xf32>
    %174 = vector.shape_cast %173 : vector<1x32xf32> to vector<1x1x32xf32>
    %175 = vector.broadcast %174 : vector<1x1x32xf32> to vector<1x8x32xf32>
    %176 = arith.mulf %172, %175 : vector<1x8x32xf32>
    %c0_105 = arith.constant 0 : index
    %c0_106 = arith.constant 0 : index
    %177 = vector.load %arg10[%c0_105, %c0_106] : memref<1x32xf32, #tpu.memory_space<vmem>>, vector<1x32xf32>
    %178 = vector.shape_cast %177 : vector<1x32xf32> to vector<1x1x32xf32>
    %179 = vector.broadcast %178 : vector<1x1x32xf32> to vector<1x8x32xf32>
    %180 = arith.addf %176, %179 : vector<1x8x32xf32>
    %c0_107 = arith.constant 0 : index
    %c0_108 = arith.constant 0 : index
    %c0_109 = arith.constant 0 : index
    %181 = vector.load %arg11[%c0_107, %c0_108, %c0_109] : memref<1x8x32xf32, #tpu.memory_space<vmem>>, vector<1x8x32xf32>
    tpu.vector_store %arg11[%c0_107, %c0_108, %c0_109], %180 {strides = array<i32>} : memref<1x8x32xf32, #tpu.memory_space<vmem>>, vector<1x8x32xf32>,
    return
  }
  func.func @transform_0(%arg0: i32, %arg1: i32) -> (i32, i32, i32) {
    %c0_i32 = arith.constant 0 : i32
    %c0_i32_0 = arith.constant 0 : i32
    %c0_i32_1 = arith.constant 0 : i32
    return %arg0, %c0_i32, %c0_i32_0 : i32, i32, i32
  }
  func.func @transform_1(%arg0: i32, %arg1: i32) -> (i32, i32, i32) {
    %c0_i32 = arith.constant 0 : i32
    %c0_i32_0 = arith.constant 0 : i32
    %c0_i32_1 = arith.constant 0 : i32
    return %arg0, %c0_i32, %c0_i32_0 : i32, i32, i32
  }
  func.func @transform_2(%arg0: i32, %arg1: i32) -> (i32, i32, i32) {
    %c0_i32 = arith.constant 0 : i32
    %c0_i32_0 = arith.constant 0 : i32
    %c0_i32_1 = arith.constant 0 : i32
    return %arg0, %c0_i32, %c0_i32_0 : i32, i32, i32
  }
  func.func @transform_3(%arg0: i32, %arg1: i32) -> (i32, i32, i32) {
    %c0_i32 = arith.constant 0 : i32
    %c0_i32_0 = arith.constant 0 : i32
    %c0_i32_1 = arith.constant 0 : i32
    %c0_i32_2 = arith.constant 0 : i32
    return %c0_i32, %c0_i32_0, %c0_i32_1 : i32, i32, i32
  }
  func.func @transform_4(%arg0: i32, %arg1: i32) -> (i32, i32, i32) {
    %c0_i32 = arith.constant 0 : i32
    %c0_i32_0 = arith.constant 0 : i32
    %c0_i32_1 = arith.constant 0 : i32
    %c0_i32_2 = arith.constant 0 : i32
    return %c0_i32, %c0_i32_0, %c0_i32_1 : i32, i32, i32
  }
  func.func @transform_5(%arg0: i32, %arg1: i32) -> (i32, i32, i32) {
    %c0_i32 = arith.constant 0 : i32
    %c0_i32_0 = arith.constant 0 : i32
    %c0_i32_1 = arith.constant 0 : i32
    %c0_i32_2 = arith.constant 0 : i32
    return %c0_i32, %c0_i32_0, %c0_i32_1 : i32, i32, i32
  }
  func.func @transform_6(%arg0: i32, %arg1: i32) -> (i32, i32) {
    %c0_i32 = arith.constant 0 : i32
    %c0_i32_0 = arith.constant 0 : i32
    %c0_i32_1 = arith.constant 0 : i32
    return %c0_i32, %c0_i32_0 : i32, i32
  }
  func.func @transform_7(%arg0: i32, %arg1: i32) -> (i32, i32) {
    %c0_i32 = arith.constant 0 : i32
    %c0_i32_0 = arith.constant 0 : i32
    %c0_i32_1 = arith.constant 0 : i32
    return %c0_i32, %c0_i32_0 : i32, i32
  }
  func.func @transform_8(%arg0: i32, %arg1: i32) -> (i32, i32) {
    %c0_i32 = arith.constant 0 : i32
    %c0_i32_0 = arith.constant 0 : i32
    %c0_i32_1 = arith.constant 0 : i32
    return %c0_i32, %c0_i32_0 : i32, i32
  }
  func.func @transform_9(%arg0: i32, %arg1: i32) -> (i32, i32, i32) {
    %c0_i32 = arith.constant 0 : i32
    %c0_i32_0 = arith.constant 0 : i32
    %c0_i32_1 = arith.constant 0 : i32
    return %arg0, %c0_i32, %c0_i32_0 : i32, i32, i32
  }
  func.func @transform_10(%arg0: i32, %arg1: i32) -> (i32, i32, i32, i32) {
    %c0_i32 = arith.constant 0 : i32
    %c0_i32_0 = arith.constant 0 : i32
    %c0_i32_1 = arith.constant 0 : i32
    return %arg0, %arg1, %c0_i32, %c0_i32_0 : i32, i32, i32, i32
  }
}

</mosaic_0001>

<bundles_post_ra>
// kernel: tpu_custom_call.1
= control target key start
LH: loop header
LB: loop body
LE: loop exit
PB: predicated region body
PF: predicated region fallthrough
CT: control target
= control target key end

     0   :  { %s2046_s0 = inlined_call_operand.vmem [shape: f32[2,8,32], index: 0, kind: input, shape index: {}]   ;;  %s2047_s1 = inlined_call_operand.vmem [shape: f32[2,8,32], index: 1, kind: input, shape index: {}]   ;;  %s2048_s2 = inlined_call_operand.vmem [shape: f32[2,8,32], index: 2, kind: input, shape index: {}]   ;;  %s2049_s3 = inlined_call_operand.vmem [shape: bf16[4,32,8], index: 3, kind: input, shape index: {}]   ;;  %s2050_s4 = inlined_call_operand.vmem [shape: bf16[4,32,8], index: 4, kind: input, shape index: {}]   ;;  %s2051_s5 = inlined_call_operand.vmem [shape: bf16[4,32,8], index: 5, kind: input, shape index: {}]   ;;  %s2052_s6 = inlined_call_operand.vmem [shape: bf16[32,32], index: 6, kind: input, shape index: {}]   ;;  %s2053_s7 = inlined_call_operand.vmem [shape: f32[1,32], index: 7, kind: input, shape index: {}]   ;;  %s2054_s8 = inlined_call_operand.vmem [shape: f32[1,32], index: 8, kind: input, shape index: {}]   ;;  %s2055_s9 = inlined_call_operand.hbm [shape: f32[2,8,32], index: 9, kind: output, shape index: {0}]   ;;  %s2056_s10 = inlined_call_operand.hbm [shape: bf16[2,4,8,8], index: 10, kind: output, shape index: {1}]  }
   0x1   :  { %2059 = sst [smem:[#allocation14_spill]] %s2046_s0 }
   0x2   :  { %2060 = sst [smem:[#allocation15_spill]] %s2047_s1 }
   0x3   :  { %2061 = sst [smem:[#allocation16_spill]] %s2048_s2 }
   0x4   :  { %2062 = sst [smem:[#allocation17_spill]] %s2049_s3 }
   0x5   :  { %16 = vsyncpa [#allocation7], 0 }
   0x6   :  { %18 = vsyncpa [#allocation7 + $0x1], 0 }
   0x7   :  { %19 = vsyncpa [#allocation9], 0 }
   0x8   :  { %21 = vsyncpa [#allocation9 + $0x1], 0  ;;  %s1756_s13 = smov 0   ;;  %s1758_s14 = smov 0  }
   0x9   :  { %s1760_s15 = smov 0   ;;  %s1762_s16 = smov 0  }
   0xa   :  { %s1764_s17 = smov 0   ;;  %s1766_s18 = smov 0  }
   0xb LB: > { %2063 = sst [smem:[#allocation12_spill]] %s1689_s17  ;;  %s1287_s19 = sadd.s32 4294967295, %s1693_s18   ;;  %s1693_s18 = sphi %s1766_s18, %s27_s18   ;;  %s1689_s17 = sphi %s1764_s17, %s2072_s17   ;;  %s1685_s16 = sphi %s1762_s16, %s2071_s16   ;;  %s1681_s15 = sphi %s1760_s15, %s2075_s15   ;;  %s1677_s14 = sphi %s1758_s14, %s2074_s14   ;;  %s1673_s13 = sphi %s1756_s13, %s2073_s13  }
   0xc   : > { %s1288_s20 = sadd.s32 4294967294, %s1693_s18   ;;  %s39_s21 = sadd.s32 1, %s1689_s17 }
   0xd   : > { %s250_s22 = sadd.s32 1, %s1681_s15  ;;  %p41_p0 = scmp.ge.s32.totalorder %s39_s21, 2 }
   0xe   : > { %p260_p1 = scmp.ne.s32.totalorder %s1681_s15, %s1677_s14  ;;  %p261_p2 = scmp.eq.s32.totalorder %s1287_s19, 1 }
   0xf   : > { %p266_p3 = scmp.ne.s32.totalorder %s1677_s14, %s1673_s13  ;;  %s2077_s21 = smov (%p41_p0, %s39_s21), 0 }
  0x10   : > { %2064 = sst [smem:[#allocation13_spill]] %s2077_s21  ;;  %p1796_p4 = por %p261_p2, %p260_p1 }
  0x11   : > { %p267_p5 = scmp.eq.s32.totalorder %s1288_s20, 1  ;;  %s247_s24 = ssub.s32 %s1689_s17, %s2077_s21 }
  0x12   : > { %p1291_p6 = scmp.ge.s32.totalorder %s1693_s18, 1  ;;  %p248_p7 = scmp.eq.s32.totalorder %s247_s24, 0 }
  0x13   : > { %p1803_p8 = por %p267_p5, %p266_p3  ;;  %p352_p9 = scmp.lt.s32.totalorder %s1693_s18, 3 }
  0x14   : > { %s1809_s26 = scalar_select %p248_p7, %s1681_s15, %s250_s22  }
  0x15   : > { %p353_p10 = pnand %p1291_p6, %p352_p9 }
  0x16   : > { %s2067_s3 = sld [smem:[#allocation17_spill]] (!%p353_p10)  ;;  %p402_p11 = scmp.lt.s32.totalorder (!%p353_p10), %s1685_s16, 1 }
  0x17   : > { %356 = sbr.rel (%p353_p10) target bundleno = 2424 (0x978), region = 56  ;;  %s2068_s0 = sld [smem:[#allocation14_spill]] (!%p353_p10) }
  0x18   : > { %s2069_s1 = sld [smem:[#allocation15_spill]] (!%p353_p10)  ;;  %s1887_s12 = sand.u32 (!%p353_p10), 1, %s1677_s14  }
  0x19   : > { %s2070_s2 = sld [smem:[#allocation16_spill]] (!%p353_p10)  ;;  %s1293_s19 = sshll.u32 (!%p353_p10), %s1887_s12, 4 }
  0x1a   : > { %s1891_s20 = scalar_lea.vmem (!%p353_p10), [#allocation8], %s1293_s19  ;;  %s1696_s19 = smov (!%p353_p10), 16  }
  0x1b   : > { %s1697_s28 = smov (!%p353_p10), 24   ;;  %s1494_s30 = sshll.u32 (!%p353_p10), %s1685_s16, 4 }
  0x1c   : > { %v1469_v0 = vld [vmem:[%s2067_s3 + $0x8] sm:$0xff]  ;;  %v1468_v2 = vld [vmem:[%s2067_s3] sm:$0xff]  ;;  %s403_s22 = scalar_select %p402_p11, %s1685_s16, 1  ;;  %vm422_vm0 = vcmask 257024   ;;  %vm449_vm1 = vcmask 261120   ;;  %vm532_vm2 = vcmask 64512  }
  0x1d   : > { %v1471_v1 = vld [vmem:[%s2050_s4 + $0x8] sm:$0xff]  ;;  %459 = vmatpush.bf16.msra.mxu0 %v1469_v0  ;;  %v1470_v3 = vld [vmem:[%s2050_s4] sm:$0xff]  ;;  %v1477_v21 = vld [vmem:[%s2050_s4 + $0x18] sm:$0xff]  ;;  %vm570_vm3 = vcmask 1043456   ;;  %vm564_vm4 = vcmask 60416   ;;  %vm739_vm5 = vcmask 126016  }
  0x1e   : > { %491 = vmatpush.bf16.msra.mxu1 %v1471_v1  ;;  %s1825_s24 = sshll.u32 %s403_s22, 3  ;;  %v1473_v17 = vld [vmem:[%s2051_s5 + $0x8] sm:$0xff]  ;;  %v1472_v20 = vld [vmem:[%s2051_s5] sm:$0xff]  ;;  %v1476_v22 = vld [vmem:[%s2050_s4 + $0x10] sm:$0xff]  ;;  %vm891_vm6 = vcmask 191616   ;;  %vm1043_vm7 = vcmask 257216  }
  0x1f   : > { %s405_s29 = scalar_lea.vmem %s2068_s0, %s1825_s24  ;;  %s409_s17 = scalar_lea.vmem %s2069_s1, %s1825_s24  ;;  %523 = vmatpush.bf16.msra.mxu2 %v1473_v17  ;;  %v1475_v27 = vld [vmem:[%s2067_s3 + $0x18] sm:$0xff]  ;;  %v1474_v28 = vld [vmem:[%s2067_s3 + $0x10] sm:$0xff]  ;;  %v1483_v51 = vld [vmem:[%s2050_s4 + $0x28] sm:$0xff] }
  0x20   : > { %v1835_v4 = vld [vmem:[%s405_s29] sm:$0xff]  ;;  %s413_s11 = scalar_lea.vmem %s2070_s2, %s1825_s24  ;;  %v1479_v49 = vld [vmem:[%s2051_s5 + $0x18] sm:$0xff]  ;;  %v1478_v50 = vld [vmem:[%s2051_s5 + $0x10] sm:$0xff]  ;;  %s1695_s29 = smov 8  }
  0x21   : > { %460 = vmatpush.bf16.msra.mxu0 %v1468_v2  ;;  %v424_v5 = vld [vmem:[%s409_s17] sm:$0xff]  ;;  %v421_v6 = vpack.c.bf16 %v1835_v4, %v1835_v4  ;;  %v1481_v59 = vld [vmem:[%s2067_s3 + $0x28] sm:$0xff]  ;;  %s1126_s27 = scalar_lea.sflag [#allocation9], %s1887_s12  ;;  %s1603_s1 = scalar_lea.hbm %s2056_s10, 32 }
  0x22   : > { %492 = vmatpush.bf16.msra.mxu1 %v1470_v3  ;;  %v425_v7 = vpack.c.bf16 %v424_v5, %v424_v5  ;;  %v427_v18 = vld [vmem:[%s413_s11] sm:$0xff]  ;;  %s1153_s11 = scalar_lea.hbm %s2056_s10, %s1494_s30 }
  0x23   : > { %423 = vst.msk [vmem:[#allocation2] sm:$0xf] %vm422_vm0, %v421_v6  ;;  %v428_v19 = vpack.c.bf16 %v427_v18, %v427_v18  ;;  %524 = vmatpush.bf16.msra.mxu2 %v1472_v20  ;;  %v1482_v52 = vld [vmem:[%s2050_s4 + $0x20] sm:$0xff]  ;;  %v1485_v20 = vld [vmem:[%s2051_s5 + $0x28] sm:$0xff]  ;;  %s1156_s22 = sshll.u32 %s1153_s11, 4  ;;  %s1157_s22 = int_to_ptr.hbm [resolvable:$true] %s1156_s22 }
  0x24   : > { %426 = vst.msk [vmem:[#allocation3] sm:$0xf] %vm422_vm0, %v425_v7  ;;  %v1480_v60 = vld [vmem:[%s2067_s3 + $0x20] sm:$0xff] }
  0x25   : > { %429 = vst.msk [vmem:[#allocation4] sm:$0xf] %vm422_vm0, %v428_v19 }
  0x26   : > { %612 = vmatpush.bf16.msrb.mxu1 %v1475_v27 }
  0x27   : > { %642 = vmatpush.bf16.msrb.mxu2 %v1477_v21  ;;  %v1484_v21 = vld [vmem:[%s2051_s5 + $0x20] sm:$0xff] }
  0x2a   : > { %v1841_v8 = vld [vmem:[#allocation2] sm:$0xf]  ;;  %613 = vmatpush.bf16.msrb.mxu1 %v1474_v28 }
  0x2b   : > { %1305 = vmatmul.msk.bf16.vlgmr.msra.gmra.mxu0 %vm449_vm1, %v1841_v8  ;;  %v1845_v9 = vld [vmem:[#allocation3] sm:$0xf]  ;;  %643 = vmatpush.bf16.msrb.mxu2 %v1476_v22  ;;  %v1489_v22 = vld [vmem:[%s2050_s4 + $0x38] sm:$0xff] }
  0x2c   : > { %1314 = vmatmul.msk.bf16.vlgmr.msra.gmra.mxu1 %vm449_vm1, %v1845_v9  ;;  %v1868_v23 = vld [vmem:[#allocation4] sm:$0xf] }
  0x2d   : > { %1323 = vmatmul.msk.bf16.vlgmr.msra.gmra.mxu2 %vm449_vm1, %v1868_v23 }
  0x2f   : > { %764 = vmatpush.bf16.msra.mxu2 %v1481_v59 }
  0x33   : > { %765 = vmatpush.bf16.msra.mxu2 %v1480_v60 }
  0x3c   : > { %1338 = vmatmul.msk.bf16.vlgmr.msrb.gmra.mxu1 %vm449_vm1, %v1841_v8 }
  0x3d   : > { %1351 = vmatmul.msk.bf16.vlgmr.msrb.gmra.mxu2 %vm449_vm1, %v1845_v9 }
  0x4d   : > { %1380 = vmatmul.msk.bf16.vlgmr.msra.gmra.mxu2 %vm449_vm1, %v1841_v8 }
  0xa8   : > { %v462_v10 = vpop.f32.mrf.mxu0 }
  0xa9   : > { %v494_v11 = vpop.f32.mrf.mxu1  ;;  %v530_v14 = vpack.c.bf16 %v462_v10, %v462_v10 }
  0xaa   : > { %v531_v12 = vpack.c.bf16 %v494_v11, %v494_v11 }
  0xac   : > { %v537_v13 = vsel %vm532_vm2, %v531_v12, 0 }
  0xad   : > { %546 = vmatpush.bf16.xpose.msra.mxu3 %v537_v13 }
  0xb0   : > { %v464_v15 = vpop.f32.mrf.mxu0  ;;  %v526_v31 = vpop.f32.mrf.mxu2 }
  0xb1   : > { %v496_v16 = vpop.f32.mrf.mxu1  ;;  %v566_v32 = vpack.c.bf16 %v526_v31, %v526_v31  ;;  %v1486_v31 = vld [vmem:[%s2067_s3 + $0x30] sm:$0xff] }
  0xb3   : > { %v572_v34 = vsel %vm570_vm3, %v566_v32, 0 }
  0xb4   : > { %1324 = vmatmul.msk.bf16.vlgmr.msra.gmra.mxu3 %vm532_vm2, %v530_v14  ;;  %581 = vmatpush.bf16.msrb.mxu0 %v572_v34 }
  0xb5   : > { %672 = vmatpush.bf16.msrb.mxu3 %v1479_v49 }
  0xb8   : > { %v528_v35 = vpop.f32.mrf.mxu2 }
  0xb9   : > { %v615_v42 = vpop.f32.mrf.mxu1  ;;  %673 = vmatpush.bf16.msrb.mxu3 %v1478_v50 }
  0xba   : > { %v679_v48 = vpack.c.bf16 %v615_v42, %v615_v42 }
  0xbd   : > { %794 = vmatpush.bf16.msra.mxu3 %v1483_v51 }
  0xc0   : > { %v645_v38 = vpop.f32.mrf.mxu2 }
  0xc1   : > { %v680_v39 = vpack.c.bf16 %v645_v38, %v645_v38  ;;  %v617_v43 = vpop.f32.mrf.mxu1  ;;  %795 = vmatpush.bf16.msra.mxu3 %v1482_v52 }
  0xc3   : > { %v685_v40 = vsel %vm532_vm2, %v680_v39, 0 }
  0xc4   : > { %694 = vmatpush.bf16.xpose.msra.mxu0 %v685_v40  ;;  %1364 = vmatmul.msk.bf16.vlgmr.msrb.gmra.mxu3 %vm449_vm1, %v1868_v23 }
  0xc8   : > { %v647_v41 = vpop.f32.mrf.mxu2 }
  0xd0   : > { %v767_v13 = vpop.f32.mrf.mxu2 }
  0xd1   : > { %v831_v19 = vpack.c.bf16 %v767_v13, %v767_v13 }
  0xd4   : > { %1393 = vmatmul.msk.bf16.vlgmr.msra.gmra.mxu3 %vm449_vm1, %v1845_v9 }
  0xd8   : > { %v769_v14 = vpop.f32.mrf.mxu2 }
 0x137   : > { %v548_v24 = vpop.f32.mrf.mxu3 }
 0x138   : > { %v552_v25 = vsel %vm532_vm2, %v548_v24, -inf }
 0x139   : > { %553 = vmax.xlane.f32.xlu0 %v552_v25 }
 0x13f   : > { %v550_v26 = vpop.f32.mrf.mxu3 }
 0x147   : > { %v675_v61 = vpop.f32.mrf.mxu3 }
 0x148   : > { %v714_v63 = vpack.c.bf16 %v675_v61, %v675_v61 }
 0x14a   : > { %v719_v1 = vsel %vm570_vm3, %v714_v63, 0 }
 0x14b   : > { %728 = vmatpush.bf16.msra.mxu1 %v719_v1 }
 0x14f   : > { %v677_v3 = vpop.f32.mrf.mxu3 }
 0x157   : > { %v797_v7 = vpop.f32.mrf.mxu3 }
 0x158   : > { %v832_v10 = vpack.c.bf16 %v797_v7, %v797_v7 }
 0x15a   : > { %v837_v11 = vsel %vm532_vm2, %v832_v10, 0 }
 0x15b   : > { %846 = vmatpush.bf16.xpose.msrb.mxu1 %v837_v11 }
 0x15f   : > { %v799_v12 = vpop.f32.mrf.mxu3 }
 0x160   : > { %v1493_v12 = vld [vmem:[%s2052_s6 + $0x8] sm:$0xff] }
 0x1ac   : > { %v554_v29 = vpop.xlane.xlu0 %553 }
 0x1ad   : > { %v555_v30 = vsub.f32 %v548_v24, %v554_v29  ;;  %v1488_v24 = vld [vmem:[%s2050_s4 + $0x30] sm:$0xff] }
 0x1af   : > { %v556_v33 = vmul.f32 1.442695, %v555_v30  ;;  %v1487_v30 = vld [vmem:[%s2067_s3 + $0x38] sm:$0xff] }
 0x1b0   : > { %916 = vmatpush.bf16.msrb.mxu3 %v1487_v30 }
 0x1b1   : > { %1563 = vpow2.f32 %v556_v33 }
 0x1b4   : > { %917 = vmatpush.bf16.msrb.mxu3 %v1486_v31 }
 0x1b7   : > { %v1564_v36 = vpop.eup %1563  ;;  %1422 = vmatmul.msk.bf16.vlgmr.msrb.gmra.mxu3 %vm449_vm1, %v1841_v8 }
 0x1b8   : > { %v558_v37 = vsel %vm532_vm2, %v1564_v36, 0.0 }
 0x1b9   : > { %559 = vadd.xlane.f32.xlu0 %v558_v37 }
 0x22c   : > { %v560_v44 = vpop.xlane.xlu0 %559 }
 0x22d   : > { %1565 = vrcp.f32 %v560_v44 }
 0x233   : > { %v1566_v45 = vpop.eup %1565 }
 0x234   : > { %v562_v46 = vmul.f32 %v1566_v45, %v1564_v36 }
 0x236   : > { %v563_v47 = vpack.c.bf16 %v562_v46, %v562_v46 }
 0x238   : > { %1325 = vmatmul.msk.bf16.vlgmr.msrb.gmra.mxu0 %vm532_vm2, %v563_v47  ;;  %565 = vst.msk [vmem:[%s1891_s20] sm:$0xf] %vm564_vm4, %v563_v47 }
 0x239   : > { %824 = vmatpush.bf16.msrb.mxu0 %v1485_v20 }
 0x23a   : > { %v919_v44 = vpop.f32.mrf.mxu3 }
 0x23b   : > { %v983_v51 = vpack.c.bf16 %v919_v44, %v919_v44 }
 0x23d   : > { %825 = vmatpush.bf16.msrb.mxu0 %v1484_v21 }
 0x242   : > { %v921_v45 = vpop.f32.mrf.mxu3 }
 0x248   : > { %1365 = vmatmul.msk.bf16.vlgmr.msra.gmra.mxu0 %vm532_vm2, %v679_v48 }
 0x249   : > { %946 = vmatpush.bf16.msra.mxu0 %v1489_v22 }
 0x24d   : > { %947 = vmatpush.bf16.msra.mxu0 %v1488_v24  ;;  %v1698_v24 = vmov 32.0  }
 0x258   : > { %1406 = vmatmul.msk.bf16.vlgmr.msrb.gmra.mxu0 %vm449_vm1, %v1868_v23 }
 0x259   : > { %1071 = vmatpush.bf16.msrb.mxu0 %v1493_v12 }
 0x268   : > { %1435 = vmatmul.msk.bf16.vlgmr.msra.gmra.mxu0 %vm449_vm1, %v1845_v9 }
 0x2b5   : > { %v583_v53 = vpop.f32.mrf.mxu0 }
 0x2b6   : > { %v587_v54 = vpack.c.bf16 %v583_v53, %v583_v53  ;;  %v1491_v53 = vld [vmem:[%s2051_s5 + $0x38] sm:$0xff] }
 0x2b8   : > { %588 = vst.msk [vmem:[#allocation5] sm:$0xf] %vm564_vm4, %v587_v54 }
 0x2bd   : > { %v585_v55 = vpop.f32.mrf.mxu0 }
 0x2be   : > { %v1490_v55 = vld [vmem:[%s2051_s5 + $0x30] sm:$0xff] }
 0x2c5   : > { %v696_v56 = vpop.f32.mrf.mxu0 }
 0x2c6   : > { %v700_v57 = vsel %vm532_vm2, %v696_v56, -inf }
 0x2c7   : > { %701 = vmax.xlane.f32.xlu1 %v700_v57 }
 0x2cd   : > { %v698_v58 = vpop.f32.mrf.mxu0 }
 0x2d5   : > { %v827_v9 = vpop.f32.mrf.mxu0 }
 0x2d6   : > { %v866_v35 = vpack.c.bf16 %v827_v9, %v827_v9 }
 0x2d8   : > { %v871_v36 = vsel %vm570_vm3, %v866_v35, 0 }
 0x2d9   : > { %880 = vmatpush.bf16.msrb.mxu2 %v871_v36 }
 0x2dd   : > { %v829_v39 = vpop.f32.mrf.mxu0 }
 0x2e5   : > { %v949_v41 = vpop.f32.mrf.mxu0 }
 0x2e6   : > { %v984_v8 = vpack.c.bf16 %v949_v41, %v949_v41 }
 0x2e8   : > { %v989_v42 = vsel %vm532_vm2, %v984_v8, 0 }
 0x2e9   : > { %998 = vmatpush.bf16.xpose.msra.mxu2 %v989_v42 }
 0x2ed   : > { %v951_v43 = vpop.f32.mrf.mxu0 }
 0x33a   : > { %v702_v62 = vpop.xlane.xlu1 %701 }
 0x33b   : > { %v703_v0 = vsub.f32 %v696_v56, %v702_v62 }
 0x33d   : > { %v704_v2 = vmul.f32 1.442695, %v703_v0 }
 0x33f   : > { %1567 = vpow2.f32 %v704_v2 }
 0x345   : > { %v1568_v5 = vpop.eup %1567 }
 0x346   : > { %v706_v6 = vsel %vm532_vm2, %v1568_v5, 0.0 }
 0x347   : > { %707 = vadd.xlane.f32.xlu1 %v706_v6 }
 0x3ba   : > { %v708_v15 = vpop.xlane.xlu1 %707 }
 0x3bb   : > { %1569 = vrcp.f32 %v708_v15 }
 0x3c1   : > { %v1570_v16 = vpop.eup %1569 }
 0x3c2   : > { %v710_v17 = vmul.f32 %v1570_v16, %v1568_v5  ;;  %v1492_v16 = vld [vmem:[%s2052_s6] sm:$0xff] }
 0x3c3   : > { %1072 = vmatpush.bf16.msrb.mxu0 %v1492_v16 }
 0x3c4   : > { %v711_v18 = vpack.c.bf16 %v710_v17, %v710_v17 }
 0x3c6   : > { %1367 = vmatmul.msk.bf16.vlgmr.msra.gmra.mxu1 %vm532_vm2, %v711_v18  ;;  %1366 = vst.msk [vmem:[%s1891_s20 + $0x4] sm:$0xf] %vm564_vm4, %v711_v18 }
 0x3c7   : > { %976 = vmatpush.bf16.msra.mxu1 %v1491_v53 }
 0x3cb   : > { %977 = vmatpush.bf16.msra.mxu1 %v1490_v55 }
 0x3d6   : > { %1407 = vmatmul.msk.bf16.vlgmr.msrb.gmra.mxu1 %vm532_vm2, %v831_v19 }
 0x3e6   : > { %1448 = vmatmul.msk.bf16.vlgmr.msra.gmra.mxu1 %vm449_vm1, %v1868_v23 }
 0x443   : > { %v730_v25 = vpop.f32.mrf.mxu1 }
 0x444   : > { %v734_v40 = vpack.c.bf16 %v730_v25, %v730_v25 }
 0x44b   : > { %v732_v26 = vpop.f32.mrf.mxu1 }
 0x453   : > { %v848_v27 = vpop.f32.mrf.mxu1 }
 0x454   : > { %v852_v28 = vsel %vm532_vm2, %v848_v27, -inf }
 0x455   : > { %853 = vmax.xlane.f32.xlu2 %v852_v28 }
 0x45b   : > { %v850_v29 = vpop.f32.mrf.mxu1 }
 0x463   : > { %v979_v63 = vpop.f32.mrf.mxu1 }
 0x464   : > { %v1018_v0 = vpack.c.bf16 %v979_v63, %v979_v63 }
 0x466   : > { %v1023_v1 = vsel %vm570_vm3, %v1018_v0, 0 }
 0x467   : > { %1032 = vmatpush.bf16.msra.mxu3 %v1023_v1 }
 0x46b   : > { %v981_v3 = vpop.f32.mrf.mxu1 }
 0x4c8   : > { %v854_v32 = vpop.xlane.xlu2 %853 }
 0x4c9   : > { %v855_v33 = vsub.f32 %v848_v27, %v854_v32 }
 0x4cb   : > { %v856_v34 = vmul.f32 1.442695, %v855_v33 }
 0x4cd   : > { %1571 = vpow2.f32 %v856_v34 }
 0x4d3   : > { %v1572_v37 = vpop.eup %1571 }
 0x4d4   : > { %v858_v38 = vsel %vm532_vm2, %v1572_v37, 0.0 }
 0x4d5   : > { %859 = vadd.xlane.f32.xlu2 %v858_v38 }
 0x4ed   : > { %736 = vrot.lane.b32.xlu2 %v734_v40, %s1695_s29 }
 0x548   : > { %v860_v46 = vpop.xlane.xlu2 %859 }
 0x549   : > { %1573 = vrcp.f32 %v860_v46 }
 0x54f   : > { %v1574_v47 = vpop.eup %1573 }
 0x550   : > { %v862_v48 = vmul.f32 %v1574_v47, %v1572_v37  ;;  %v737_v49 = vpop.permute.xlu2 %736 }
 0x551   : > { %740 = vst.msk [vmem:[#allocation5] sm:$0xf] %vm739_vm5, %v737_v49 }
 0x552   : > { %v863_v50 = vpack.c.bf16 %v862_v48, %v862_v48 }
 0x554   : > { %1409 = vmatmul.msk.bf16.vlgmr.msrb.gmra.mxu2 %vm532_vm2, %v863_v50  ;;  %1408 = vst.msk [vmem:[%s1891_s20 + $0x8] sm:$0xf] %vm564_vm4, %v863_v50 }
 0x564   : > { %1449 = vmatmul.msk.bf16.vlgmr.msra.gmra.mxu2 %vm532_vm2, %v983_v51 }
 0x5d7   : > { %v882_v52 = vpop.f32.mrf.mxu2 }
 0x5d8   : > { %v886_v59 = vpack.c.bf16 %v882_v52, %v882_v52 }
 0x5df   : > { %v884_v54 = vpop.f32.mrf.mxu2 }
 0x5e7   : > { %v1000_v56 = vpop.f32.mrf.mxu2 }
 0x5e8   : > { %v1004_v57 = vsel %vm532_vm2, %v1000_v56, -inf }
 0x5e9   : > { %1005 = vmax.xlane.f32.xlu0 %v1004_v57 }
 0x5ef   : > { %v1002_v58 = vpop.f32.mrf.mxu2 }
 0x5fd   : > { %888 = vrot.lane.b32.xlu0 %v886_v59, %s1696_s19  ;;  %s1154_s19 = sshll.u32 %s1891_s20, 4  ;;  %s1155_s19 = int_to_ptr.vmem [resolvable:$true] %s1154_s19 }
 0x65c   : > { %v1006_v60 = vpop.xlane.xlu0 %1005 }
 0x65d   : > { %v1007_v61 = vsub.f32 %v1000_v56, %v1006_v60 }
 0x65f   : > { %v1008_v62 = vmul.f32 1.442695, %v1007_v61 }
 0x661   : > { %1575 = vpow2.f32 %v1008_v62 }
 0x667   : > { %v1576_v2 = vpop.eup %1575 }
 0x668   : > { %v1010_v23 = vsel %vm532_vm2, %v1576_v2, 0.0 }
 0x669   : > { %1011 = vadd.xlane.f32.xlu1 %v1010_v23 }
 0x66f   : > { %v889_v5 = vpop.permute.xlu0 %888 }
 0x670   : > { %892 = vst.msk [vmem:[#allocation5] sm:$0xf] %vm891_vm6, %v889_v5 }
 0x6dc   : > { %v1012_v6 = vpop.xlane.xlu1 %1011 }
 0x6dd   : > { %1577 = vrcp.f32 %v1012_v6 }
 0x6de   : > { %1579 = vrcp.f32 %v1698_v24 }
 0x6e3   : > { %v1578_v7 = vpop.eup %1577 }
 0x6e4   : > { %v1014_v10 = vmul.f32 %v1578_v7, %v1576_v2  ;;  %v1580_v25 = vpop.eup %1579 }
 0x6e5   : > { %v1084_v26 = vmul.f32 32.0, %v1580_v25  ;;  %vm1088_vm8 = vweird.f32 %v1580_v25 }
 0x6e6   : > { %v1015_v11 = vpack.c.bf16 %v1014_v10, %v1014_v10 }
 0x6e7   : > { %v1085_v27 = vsub.f32 1.0, %v1084_v26 }
 0x6e8   : > { %1451 = vmatmul.msk.bf16.vlgmr.msra.gmra.mxu3 %vm532_vm2, %v1015_v11  ;;  %1450 = vst.msk [vmem:[%s1891_s20 + $0xc] sm:$0xf] %vm564_vm4, %v1015_v11 }
 0x6e9   : > { %v1086_v28 = vmul.f32 %v1580_v25, %v1085_v27 }
 0x6eb   : > { %v1087_v29 = vadd.f32 %v1580_v25, %v1086_v28 }
 0x6ed   : > { %v1089_v30 = vsel %vm1088_vm8, %v1580_v25, %v1087_v29 }
 0x76b   : > { %v1034_v13 = vpop.f32.mrf.mxu3 }
 0x76c   : > { %v1038_v14 = vpack.c.bf16 %v1034_v13, %v1034_v13 }
 0x76e   : > { %1040 = vrot.lane.b32.xlu1 %v1038_v14, %s1697_s28  ;;  %s1597_s28 = sshra.s32 %s1157_s22, 4  ;;  %s1598_s28 = int_to_ptr.hbm [resolvable:$true] %s1597_s28 }
 0x76f   : > { %s1599_s24 = scalar_lea.hbm %s1598_s28, 16  ;;  %p1604_p1 = scmp.lt.s32.totalorder %s1598_s28, %s2056_s10 }
 0x770   : > { %p1600_p12 = scmp.ne.s32.totalorder %s1598_s28, %s1599_s24  ;;  %p1605_p2 = scmp.lt.s32.totalorder %s1603_s1, %s1599_s24 }
 0x772   : > { %p1601_p13 = pnand %p1600_p12, %p1796_p4  ;;  %p1606_p3 = por %p1605_p2, %p1604_p1 }
 0x773   : > { %v1036_v15 = vpop.f32.mrf.mxu3 }
 0x774   : > { %p1602_p0 = pneg %p1601_p13 }
 0x776   : > { %p1607_p5 = pnand %p1606_p3, %p1602_p0 }
 0x7e0   : > { %v1041_v17 = vpop.permute.xlu1 %1040 }
 0x7e1   : > { %1044 = vst.msk [vmem:[#allocation5] sm:$0xf] %vm1043_vm7, %v1041_v17 }
 0x7e8   : > { %v1049_v18 = vld [vmem:[#allocation5] sm:$0xf] }
 0x7e9   : > { %1460 = vmatmul.msk.bf16.vlgmr.msrb.gmra.mxu0 %vm449_vm1, %v1049_v18 }
 0x866   : > { %v1074_v19 = vpop.f32.mrf.mxu0 }
 0x867   : > { %v1079_v20 = vadd.f32 %v1074_v19, %v1835_v4 }
 0x869   : > { %v1080_v21 = vsel %vm449_vm1, %v1079_v20, 0.0 }
 0x86a   : > { %1081 = vadd.xlane.f32.xlu2 %v1080_v21 }
 0x86e   : > { %v1076_v22 = vpop.f32.mrf.mxu0 }
 0x8dd   : > { %v1082_v31 = vpop.xlane.xlu2 %1081 }
 0x8de   : > { %v1090_v32 = vmul.f32 %v1089_v30, %v1082_v31 }
 0x8e0   : > { %v1091_v4 = vsub.f32 %v1079_v20, %v1090_v32 }
 0x8e2   : > { %v1092_v33 = vmul.f32 %v1091_v4, %v1091_v4 }
 0x8e4   : > { %v1093_v34 = vsel %vm449_vm1, %v1092_v33, 0.0 }
 0x8e5   : > { %1094 = vadd.xlane.f32.xlu0 %v1093_v34 }
 0x8e6   : > { %1610 = shalt.err (!%p1607_p5)
}
 0x8e7   : > { %s1699_s20 = smov 64   ;;  %s1700_s30 = smov 4   ;;  %v1561_v42 = vld [vmem:[%s2053_s7] ss:$0 sm:$0xff] }
 0x8e8   : > { %1496 = dma.vmem_to_hbm [thread:$0]  (%p1796_p4), %s1155_s19, 256, %s1157_s22, %s1126_s27, %s1699_s20, %s1699_s20, %s1700_s30  }
 0x8e9   : > { %s1292_s0 = sshll.u32 %s1887_s12, 3  ;;  %s1463_s1 = sshll.u32 %s1685_s16, 3  ;;  %v1562_v45 = vld [vmem:[%s2054_s8] ss:$0 sm:$0xff] }
 0x8ea   : > { %s1136_s11 = scalar_lea.hbm %s2055_s9, %s1463_s1  ;;  %s394_s16 = scalar_lea.vmem [#allocation6], %s1292_s0 }
 0x8eb   : > { %s1138_s27 = sshll.u32 %s394_s16, 4  ;;  %s1140_s28 = sshll.u32 %s1136_s11, 4  ;;  %s1139_s27 = int_to_ptr.vmem [resolvable:$true] %s1138_s27  ;;  %s1141_s28 = int_to_ptr.hbm [resolvable:$true] %s1140_s28 }
 0x8ec   : > { %s1121_s24 = scalar_lea.sflag [#allocation7], %s1887_s12  ;;  %s1625_s29 = sshra.s32 %s1141_s28, 4  ;;  %s1626_s29 = int_to_ptr.hbm [resolvable:$true] %s1625_s29 }
 0x8ed   : > { %s1627_s20 = scalar_lea.hbm %s1626_s29, 8  ;;  %s1631_s0 = scalar_lea.hbm %s2055_s9, 16 }
 0x8ee   : > { %p1628_p6 = scmp.ne.s32.totalorder %s1626_s29, %s1627_s20  ;;  %p1632_p10 = scmp.lt.s32.totalorder %s1626_s29, %s2055_s9 }
 0x8ef   : > { %p1633_p11 = scmp.lt.s32.totalorder %s1631_s0, %s1627_s20 }
 0x8f0   : > { %p1629_p7 = pnand %p1628_p6, %p1796_p4 }
 0x8f1   : > { %p1634_p12 = por %p1633_p11, %p1632_p10 }
 0x8f2   : > { %p1630_p9 = pneg %p1629_p7 }
 0x8f4   : > { %p1635_p13 = pnand %p1634_p12, %p1630_p9 }
 0x958   : > { %v1095_v9 = vpop.xlane.xlu0 %1094 }
 0x959   : > { %v1096_v35 = vmul.f32 %v1095_v9, %v1089_v30 }
 0x95b   : > { %v1097_v36 = vadd.f32 1e-06, %v1096_v35 }
 0x95d   : > { %1581 = vrsqrt.f32 %v1097_v36  ;;  %vm1104_vm10 = vweird.f32 %v1097_v36 }
 0x963   : > { %v1582_v37 = vpop.eup %1581 }
 0x964   : > { %v1099_v38 = vmul.f32 %v1582_v37, %v1097_v36  ;;  %vm1105_vm9 = vweird.f32 %v1582_v37 }
 0x965   : > { %vm1106_vm11 = vmor %vm1104_vm10, %vm1105_vm9 }
 0x966   : > { %v1100_v39 = vmul.f32 %v1582_v37, %v1099_v38 }
 0x968   : > { %v1101_v40 = vmul.f32 0.5, %v1100_v39 }
 0x96a   : > { %v1102_v41 = vsub.f32 1.5, %v1101_v40 }
 0x96c   : > { %v1103_v8 = vmul.f32 %v1582_v37, %v1102_v41 }
 0x96e   : > { %v1107_v43 = vsel %vm1106_vm11, %v1582_v37, %v1103_v8 }
 0x96f   : > { %v1108_v44 = vmul.f32 %v1107_v43, %v1091_v4 }
 0x971   : > { %v1113_v46 = vmul.f32 %v1561_v42, %v1108_v44 }
 0x973   : > { %v1118_v47 = vadd.f32 %v1562_v45, %v1113_v46 }
 0x975   : > { %1119 = vst.msk [vmem:[%s394_s16] sm:$0xff] %vm449_vm1, %v1118_v47 }
 0x976   : > { %1638 = shalt.err (!%p1635_p13)
}
 0x977   : > { %1495 = dma.vmem_to_hbm [thread:$0]  (%p1796_p4), %s1139_s27, 128, %s1141_s28, %s1121_s24  }
 0x978 PF: > { %p1506_p0 = scmp.ge.s32.totalorder %s1693_s18, 2  ;;  %s1171_s12 = sand.u32 1, %s1673_s13  }
 0x979   : > { %s1172_s17 = scalar_lea.sflag [#allocation7], %s1171_s12 }
 0x97a   : > { %p1500_p1 = pnand %p1506_p0, %p1803_p8 }
 0x97c   : > { %p1501_p2 = pneg %p1500_p1 }
 0x97e   : > { %1664 = dma.done.wait (%p1501_p2), %s1172_s17, 128  }
 0x97f   : > { %1666 = vsyncadd (%p1501_p2), %s1172_s17, 4294967168  ;;  %s1182_s21 = scalar_lea.sflag [#allocation9], %s1171_s12 }
 0x980   : > { %1668 = dma.done.wait (%p1501_p2), %s1182_s21, 256  }
 0x981   : > { %1670 = vsyncadd (%p1501_p2), %s1182_s21, 4294967040  ;;  %s27_s18 = sadd.s32 1, %s1693_s18   ;;  %s2071_s16 = sld [smem:[#allocation12_spill]] }
 0x982   : > { %p24_p3 = scmp.ge.s32.totalorder %s27_s18, 4   ;;  %s2072_s17 = sld [smem:[#allocation13_spill]] }
 0x983   : > { %s2073_s13 = smov %s1677_s14  ;;  %s2074_s14 = smov %s1681_s15 }
 0x984   : > { %s2075_s15 = smov %s1809_s26  ;;  %26 = sbr.rel (!%p24_p3) target bundleno = 11 (0xb), region = 130 }
 0x989   :  { %1188 = vsyncpa [#allocation7], 1 }
 0x98a   :  { %1190 = vsyncpa [#allocation7 + $0x1], 1 }
 0x98b   :  { %1191 = vsyncpa [#allocation9], 1 }
 0x98c   :  { %1193 = vsyncpa [#allocation9 + $0x1], 1 }

</bundles_post_ra>
